<compile_context>
chip_gen: v6e
topology: v6e:2x2x1
jax: 0.10.0
libtpu: 0.0.40
codegen_flags: <defaults>
</compile_context>

<pallas_src>
import math
from functools import partial

import jax
import jax.numpy as jnp
from jax import lax
from jax.experimental import pallas as pl
from jax.experimental.pallas import tpu as pltpu

LN_EPS = 1e-6
NEG_INF = -1e18


# ----------------------------- shared math helpers (traced inside kernels) ---

def _gelu(x):
    return 0.5 * x * (1.0 + jnp.tanh(math.sqrt(2.0 / math.pi)
                                     * (x + 0.044715 * x ** 3)))


def _layernorm(x, gamma, beta, eps=LN_EPS):
    x = x.astype(jnp.float32)                       # LN stats kept in f32
    mean = jnp.mean(x, axis=-1, keepdims=True)
    var = jnp.mean((x - mean) ** 2, axis=-1, keepdims=True)
    return (x - mean) / jnp.sqrt(var + eps) * gamma + beta


# ----------------------------- tiling / compiler helpers ---------------------

_VMEM_LIMIT = None


def _vmem_limit_bytes():
    # Generation-aware scoped-VMEM limit: ~100 MiB on 128 MiB parts (v5e/v6e),
    # ~48 MiB on v7x (64 MiB per TensorCore).
    global _VMEM_LIMIT
    if _VMEM_LIMIT is None:
        try:
            cap = int(pltpu.get_tpu_info().vmem_capacity_bytes)
        except Exception:
            cap = 128 * 1024 * 1024
        _VMEM_LIMIT = int(min(max(cap - 16 * 1024 * 1024, 32 * 1024 * 1024),
                              100 * 1024 * 1024))
    return _VMEM_LIMIT


def _compiler_params(dimension_semantics):
    return pltpu.CompilerParams(dimension_semantics=dimension_semantics,
                                vmem_limit_bytes=_vmem_limit_bytes())


def _invariant_spec(shape, grid_rank):
    # Grid-invariant operand: constant index_map + single buffering (the
    # revisit DMA is elided anyway; no need for the second buffer).
    n = len(shape)
    if grid_rank == 2:
        idx = lambda b, qi: (0,) * n
    else:
        idx = lambda b, qi, f: (0,) * n
    if hasattr(pl, "Buffered"):
        try:
            return pl.BlockSpec(tuple(shape), idx, pipeline_mode=pl.Buffered(1))
        except TypeError:
            pass
    return pl.BlockSpec(tuple(shape), idx)


def _pick_block_q(tq, compute_dtype):
    # Largest q-tile that divides Tq, capped at 256 (v7x-safe); bf16 operands
    # want a multiple of 16 (sublane packing), f32 a multiple of 8.
    align = 8 if jnp.dtype(compute_dtype).itemsize >= 4 else 16
    for cand in (256, 128, 64, 32, 16, 8):
        if cand % align == 0 and tq % cand == 0:
            return cand
    # TODO(synk): pad Tq to a multiple of 8/16 instead of full-seq fallback.
    return tq


def _pick_block_ff(d_ff):
    for cand in (2048, 1024, 512, 256, 128):
        if d_ff % cand == 0:
            return cand
    return d_ff


def _heads_per_group(heads, dh):
    # Group heads so each ctx store covers >=128 lanes when dh < 128.
    if dh >= 128:
        return 1
    hpg = min(heads, max(1, -(-128 // dh)))
    while heads % hpg:
        hpg -= 1
    return hpg


# ----------------------------- Pallas kernels --------------------------------

def attn_kernel(*refs, heads, masked, ln_kv, compute_dtype):
    # Fused: LayerNorm(query source) [+ LayerNorm(kv source) for self-attn]
    #        -> Q projection (per q tile) and concatenated K|V projection
    #           (once per batch row, persistent VMEM scratch)
    #        -> per-head softmax attention (contexts stored in lane-dense head
    #           groups into a VMEM scratch)
    #        -> full-width output projection -> + residual (raw query source).
    if masked:
        (q_src_ref, kv_src_ref, mask_ref, g_ref, b_ref,
         wq_ref, bq_ref, wkv_ref, bkv_ref, wo_ref, bo_ref,
         o_ref, kv_s, q_s, ctx_s) = refs
    else:
        (q_src_ref, kv_src_ref, g_ref, b_ref,
         wq_ref, bq_ref, wkv_ref, bkv_ref, wo_ref, bo_ref,
         o_ref, kv_s, q_s, ctx_s) = refs

    d_model = wq_ref.shape[0]
    dh = d_model // heads
    scale = 1.0 / math.sqrt(dh)
    cd = compute_dtype
    gamma = g_ref[...]
    beta = b_ref[...]

    # --- KV LayerNorm + projection: once per batch row (qi == 0); the result
    #     lives in a persistent VMEM scratch across all q tiles of that row.
    @pl.when(pl.program_id(1) == 0)
    def _project_kv():
        kv_x = kv_src_ref[0]                                      # (Tk, D)
        kvn = _layernorm(kv_x, gamma, beta) if ln_kv else kv_x.astype(jnp.float32)
        kv = jnp.dot(kvn.astype(cd), wkv_ref[...].astype(cd),
                     preferred_element_type=jnp.float32) + bkv_ref[...]
        kv_s[...] = kv.astype(kv_s.dtype)                         # (Tk, 2D)

    # --- Q LayerNorm + projection for this query tile (staged in VMEM).
    q_x = q_src_ref[0].astype(jnp.float32)                        # residual
    qn = _layernorm(q_x, gamma, beta)
    q = (jnp.dot(qn.astype(cd), wq_ref[...].astype(cd),
                 preferred_element_type=jnp.float32) + bq_ref[...]) * scale
    q_s[...] = q.astype(q_s.dtype)                                # (tq, D)

    if masked:
        # Hoisted once: additive -inf bias (1, Tk), broadcasts over heads/queries.
        neg_bias = jnp.where(mask_ref[0] > 0.5, NEG_INF, 0.0).astype(jnp.float32)

    # --- Per-head attention. Reads are static ref-slice views of the staged
    #     scratches; heads are grouped so ctx stores are lane-dense (>=128).
    hpg = _heads_per_group(heads, dh)
    for grp in range(heads // hpg):
        pieces = []
        for i in range(hpg):
            h = grp * hpg + i
            lo, hi = h * dh, (h + 1) * dh
            q_h = q_s[:, lo:hi]                                   # (tq, dh)
            k_h = kv_s[:, lo:hi]                                  # (Tk, dh)
            v_h = kv_s[:, d_model + lo:d_model + hi]              # (Tk, dh)
            s = lax.dot_general(q_h, k_h, (((1,), (1,)), ((), ())),
                                preferred_element_type=jnp.float32)   # (tq, Tk)
            if masked:
                s = s + neg_bias
            m = jnp.max(s, axis=-1, keepdims=True)
            e = jnp.exp(s - m)
            p = e * pl.reciprocal(jnp.sum(e, axis=-1, keepdims=True), approx=True)
            pieces.append(jnp.dot(p.astype(cd), v_h,
                                  preferred_element_type=jnp.float32))
        ctx = pieces[0] if hpg == 1 else jnp.concatenate(pieces, axis=-1)
        ctx_s[:, grp * hpg * dh:(grp + 1) * hpg * dh] = ctx.astype(ctx_s.dtype)

    out = (jnp.dot(ctx_s[...], wo_ref[...].astype(cd),
                   preferred_element_type=jnp.float32)
           + bo_ref[...] + q_x)                                   # residual fused
    o_ref[0] = out.astype(o_ref.dtype)


def ffn_kernel(x_ref, g_ref, b_ref, w1_ref, b1_ref, w2_ref, b2_ref, o_ref,
               xn_s, acc_s, *, compute_dtype):
    # PositionwiseFeedForward: LN -> W1 -> gelu -> W2 -> +residual, with d_ff
    # tiled on the innermost ("arbitrary") grid axis and an f32 accumulator.
    cd = compute_dtype
    f = pl.program_id(2)

    @pl.when(f == 0)
    def _init():
        xn_s[...] = _layernorm(x_ref[0].astype(jnp.float32),
                               g_ref[...], b_ref[...]).astype(xn_s.dtype)
        acc_s[...] = jnp.zeros_like(acc_s)

    inter = _gelu(jnp.dot(xn_s[...], w1_ref[...].astype(cd),
                          preferred_element_type=jnp.float32) + b1_ref[...])
    acc_s[...] += jnp.dot(inter.astype(cd), w2_ref[...].astype(cd),
                          preferred_element_type=jnp.float32)

    @pl.when(f == pl.num_programs(2) - 1)
    def _finalize():
        o_ref[0] = (acc_s[...] + b2_ref[...]
                    + x_ref[0].astype(jnp.float32)).astype(o_ref.dtype)


# ----------------------------- pallas_call wrappers ---------------------------

def attention(q_src, kv_src, mask, gamma, beta, p, heads, *,
              ln_kv, block_q, compute_dtype):
    B, Tq, D = q_src.shape
    Tk = kv_src.shape[1]
    nq = Tq // block_q
    masked = mask is not None

    args = [q_src, kv_src]
    in_specs = [
        pl.BlockSpec((1, block_q, D), lambda b, qi: (b, qi, 0)),
        # Full-Tk resident kv source (index constant in qi -> revisit DMA elided).
        pl.BlockSpec((1, Tk, D), lambda b, qi: (b, 0, 0)),
    ]
    if masked:
        args.append(mask)
        in_specs.append(pl.BlockSpec((1, 1, Tk), lambda b, qi: (b, 0, 0)))
    tail = [gamma, beta, p["wq"], p["bq"], p["wkv"], p["bkv"], p["wo"], p["bo"]]
    args += tail
    in_specs += [_invariant_spec(a.shape, 2) for a in tail]

    flops = (4 * B * Tq * Tk * D          # scores + context
             + 2 * B * Tq * D * D         # q projection
             + 4 * B * Tk * D * D         # k|v projection (once per batch row)
             + 2 * B * Tq * D * D)        # output projection
    cost = pl.CostEstimate(
        flops=flops,
        transcendentals=B * heads * Tq * Tk,
        bytes_accessed=4 * (2 * B * Tq * D + B * Tk * D + 4 * D * D + 8 * D))

    kern = partial(attn_kernel, heads=heads, masked=masked, ln_kv=ln_kv,
                   compute_dtype=compute_dtype)
    return pl.pallas_call(
        kern,
        out_shape=jax.ShapeDtypeStruct((B, Tq, D), q_src.dtype),
        grid=(B, nq),
        in_specs=in_specs,
        out_specs=pl.BlockSpec((1, block_q, D), lambda b, qi: (b, qi, 0)),
        scratch_shapes=[pltpu.VMEM((Tk, 2 * D), compute_dtype),   # projected K|V
                        pltpu.VMEM((block_q, D), compute_dtype),  # projected Q
                        pltpu.VMEM((block_q, D), compute_dtype)], # context
        # qi must be "arbitrary": the kv scratch carries state across q tiles.
        compiler_params=_compiler_params(("parallel", "arbitrary")),
        cost_estimate=cost,
    )(*args)


def ffn(x, p, *, block_q, compute_dtype):
    B, Tq, D = x.shape
    d_ff = p["w1"].shape[1]
    nq = Tq // block_q
    block_ff = _pick_block_ff(d_ff)
    nff = d_ff // block_ff

    in_specs = [
        pl.BlockSpec((1, block_q, D), lambda b, qi, f: (b, qi, 0)),
        _invariant_spec(p["g"].shape, 3),
        _invariant_spec(p["b"].shape, 3),
        pl.BlockSpec((D, block_ff), lambda b, qi, f: (0, f)),     # w1 column tile
        pl.BlockSpec((1, block_ff), lambda b, qi, f: (0, f)),     # b1 tile
        pl.BlockSpec((block_ff, D), lambda b, qi, f: (f, 0)),     # w2 row tile
        _invariant_spec(p["b2"].shape, 3),
    ]
    cost = pl.CostEstimate(
        flops=4 * B * Tq * D * d_ff,
        transcendentals=B * Tq * d_ff,
        bytes_accessed=4 * (2 * B * Tq * D + 2 * D * d_ff + d_ff + D))

    return pl.pallas_call(
        partial(ffn_kernel, compute_dtype=compute_dtype),
        out_shape=jax.ShapeDtypeStruct(x.shape, x.dtype),
        grid=(B, nq, nff),
        in_specs=in_specs,
        out_specs=pl.BlockSpec((1, block_q, D), lambda b, qi, f: (b, qi, 0)),
        scratch_shapes=[pltpu.VMEM((block_q, D), compute_dtype),  # LN(x) staged
                        pltpu.VMEM((block_q, D), jnp.float32)],   # f32 accumulator
        compiler_params=_compiler_params(("parallel", "parallel", "arbitrary")),
        cost_estimate=cost,
    )(x, p["g"], p["b"], p["w1"], p["b1"], p["w2"], p["b2"])


# ----------------------------- DecoderLayer forward ---------------------------

def decoder_layer(params, inputs, memory_bank, encoder_pad_mask, heads,
                  compute_dtype=jnp.float32):
    # compute_dtype=jnp.bfloat16 halves MXU/DMA/VMEM bytes for real model
    # shapes (f32 accumulation + f32 LN/softmax retained); kept f32 here so the
    # toy demo matches the f32 reference at 2e-3.
    B, Tq, D = inputs.shape
    block_q = _pick_block_q(Tq, compute_dtype)

    # LN1 + unmasked self-attention + residual (the module passes no mask).
    query = attention(inputs, inputs, None,
                      params["ln1_g"], params["ln1_b"], params["self_attn"], heads,
                      ln_kv=True, block_q=block_q, compute_dtype=compute_dtype)
    # LN2 + cross-attention over memory_bank with encoder pad mask + residual.
    mid_plus_query = attention(query, memory_bank, encoder_pad_mask,
                               params["ln2_g"], params["ln2_b"], params["ctx_attn"],
                               heads, ln_kv=False, block_q=block_q,
                               compute_dtype=compute_dtype)
    # LN3 + FFN (d_ff tiled) + residual.
    return ffn(mid_plus_query, params["ffn"], block_q=block_q,
               compute_dtype=compute_dtype)


# ----------------------------- deterministic params ---------------------------

def init_params(key, d_model, d_ff, heads):
    ks = iter(jax.random.split(key, 32))

    def w(din, dout, scale=0.05):
        return jax.random.normal(next(ks), (din, dout), jnp.float32) * scale

    def b(dout, scale=0.05):
        return jax.random.normal(next(ks), (1, dout), jnp.float32) * scale

    def attn_params():
        return dict(wq=w(d_model, d_model), bq=b(d_model),
                    wk=w(d_model, d_model), bk=b(d_model),
                    wv=w(d_model, d_model), bv=b(d_model),
                    wo=w(d_model, d_model), bo=b(d_model))

    ones = jnp.ones((1, d_model), jnp.float32)
    zeros = jnp.zeros((1, d_model), jnp.float32)
    return dict(
        ln1_g=ones, ln1_b=zeros,
        ln2_g=ones, ln2_b=zeros,
        self_attn=attn_params(),
        ctx_attn=attn_params(),
        ffn=dict(g=ones, b=zeros,
                 w1=w(d_model, d_ff), b1=b(d_ff),
                 w2=w(d_ff, d_model), b2=b(d_model)),
    )


def fuse_kv_weights(params):
    # Precompute the concatenated K|V projection once (not per forward call).
    fused = dict(params)
    for name in ("self_attn", "ctx_attn"):
        p = dict(params[name])
        p["wkv"] = jnp.concatenate([p["wk"], p["wv"]], axis=1)   # (D, 2D)
        p["bkv"] = jnp.concatenate([p["bk"], p["bv"]], axis=1)   # (1, 2D)
        fused[name] = p
    return fused


# ----------------------------- pure-JAX reference (mirrors PyTorch) -----------

def torch_reference(params, inputs, memory_bank, enc_mask, heads):
    d_model = inputs.shape[-1]
    dh = d_model // heads

    def attn(query, key, value, p, mask):
        B, Tq, _ = query.shape
        Tk = key.shape[1]
        q = query @ p["wq"] + p["bq"]
        k = key @ p["wk"] + p["bk"]
        v = value @ p["wv"] + p["bv"]

        def split(x, T):
            return x.reshape(B, T, heads, dh).transpose(0, 2, 1, 3)

        qh = split(q, Tq) / math.sqrt(dh)
        kh, vh = split(k, Tk), split(v, Tk)
        scores = jnp.einsum("bhqd,bhkd->bhqk", qh, kh)
        if mask is not None:
            scores = jnp.where(mask[:, None] > 0.5, NEG_INF, scores)
        a = jax.nn.softmax(scores, axis=-1)
        ctx = jnp.einsum("bhqk,bhkd->bhqd", a, vh).transpose(0, 2, 1, 3)
        ctx = ctx.reshape(B, Tq, d_model)
        return ctx @ p["wo"] + p["bo"]

    input_norm = _layernorm(inputs, params["ln1_g"], params["ln1_b"])
    query = attn(input_norm, input_norm, input_norm, params["self_attn"], None) + inputs
    query_norm = _layernorm(query, params["ln2_g"], params["ln2_b"])
    mid = attn(query_norm, memory_bank, memory_bank, params["ctx_attn"], enc_mask) + query
    f = params["ffn"]
    xn = _layernorm(mid, f["g"], f["b"])
    inter = _gelu(xn @ f["w1"] + f["b1"])
    return inter @ f["w2"] + f["b2"] + mid


# ----------------------------- main -------------------------------------------

if __name__ == "__main__":
    B, Tq, Tk, D, H, FF = 2, 8, 16, 32, 4, 64

    root = jax.random.PRNGKey(0)
    k_in, k_mem, k_par = jax.random.split(root, 3)
    inputs = jax.random.normal(k_in, (B, Tq, D), jnp.float32)
    memory_bank = jax.random.normal(k_mem, (B, Tk, D), jnp.float32)

    # encoder pad mask: 1.0 where the key position is padding (to be masked out)
    valid_lens = jnp.array([13, 11])
    key_ids = jnp.arange(Tk)[None, None, :]
    encoder_pad_mask = (key_ids >= valid_lens[:, None, None]).astype(jnp.float32)  # (B,1,Tk)

    params = fuse_kv_weights(init_params(k_par, D, FF, H))

    out = decoder_layer(params, inputs, memory_bank, encoder_pad_mask, H)
    out = jax.block_until_ready(out)

    ref = torch_reference(params, inputs, memory_bank, encoder_pad_mask, H)
    max_err = float(jnp.max(jnp.abs(out - ref)))
    assert out.shape == (B, Tq, D)
    assert jnp.allclose(out, ref, atol=2e-3, rtol=2e-3), f"max_err={max_err}"

    print("KERNEL_OK")
</pallas_src>

<mosaic_0001>
module attributes {stable_mosaic.version = 11 : i64} {
  func.func @attn_kernel(%arg0: i32, %arg1: i32, %arg2: memref<1x8x32xf32, #tpu.memory_space<vmem>>, %arg3: memref<1x8x32xf32, #tpu.memory_space<vmem>>, %arg4: memref<1x32xf32, #tpu.memory_space<vmem>>, %arg5: memref<1x32xf32, #tpu.memory_space<vmem>>, %arg6: memref<32x32xf32, #tpu.memory_space<vmem>>, %arg7: memref<1x32xf32, #tpu.memory_space<vmem>>, %arg8: memref<32x64xf32, #tpu.memory_space<vmem>>, %arg9: memref<1x64xf32, #tpu.memory_space<vmem>>, %arg10: memref<32x32xf32, #tpu.memory_space<vmem>>, %arg11: memref<1x32xf32, #tpu.memory_space<vmem>>, %arg12: memref<1x8x32xf32, #tpu.memory_space<vmem>>, %arg13: memref<8x64xf32, #tpu.memory_space<vmem>>, %arg14: memref<8x32xf32, #tpu.memory_space<vmem>>, %arg15: memref<8x32xf32, #tpu.memory_space<vmem>>) attributes {dimension_semantics = [#tpu.dimension_semantics<parallel>, #tpu.dimension_semantics<arbitrary>], iteration_bounds = array<i64: 2, 1>, scalar_prefetch = 0 : i64, scratch_operands = 3 : i64, tpu.core_type = #tpu.core_type<tc>, window_params = [{transform_indices = @transform_0, window_bounds = array<i64: 1, 8, 32>}, {transform_indices = @transform_1, window_bounds = array<i64: 1, 8, 32>}, {pipeline_mode = #tpu.pipeline_mode<synchronous>, transform_indices = @transform_2, window_bounds = array<i64: 1, 32>}, {pipeline_mode = #tpu.pipeline_mode<synchronous>, transform_indices = @transform_3, window_bounds = array<i64: 1, 32>}, {pipeline_mode = #tpu.pipeline_mode<synchronous>, transform_indices = @transform_4, window_bounds = array<i64: 32, 32>}, {pipeline_mode = #tpu.pipeline_mode<synchronous>, transform_indices = @transform_5, window_bounds = array<i64: 1, 32>}, {pipeline_mode = #tpu.pipeline_mode<synchronous>, transform_indices = @transform_6, window_bounds = array<i64: 32, 64>}, {pipeline_mode = #tpu.pipeline_mode<synchronous>, transform_indices = @transform_7, window_bounds = array<i64: 1, 64>}, {pipeline_mode = #tpu.pipeline_mode<synchronous>, transform_indices = @transform_8, window_bounds = array<i64: 32, 32>}, {pipeline_mode = #tpu.pipeline_mode<synchronous>, transform_indices = @transform_9, window_bounds = array<i64: 1, 32>}, {transform_indices = @transform_10, window_bounds = array<i64: 1, 8, 32>}]} {
    %c0 = arith.constant 0 : index
    %c0_0 = arith.constant 0 : index
    %0 = vector.load %arg4[%c0, %c0_0] : memref<1x32xf32, #tpu.memory_space<vmem>>, vector<1x32xf32>
    %c0_1 = arith.constant 0 : index
    %c0_2 = arith.constant 0 : index
    %1 = vector.load %arg5[%c0_1, %c0_2] : memref<1x32xf32, #tpu.memory_space<vmem>>, vector<1x32xf32>
    %c0_i32 = arith.constant 0 : i32
    %2 = arith.cmpi eq, %arg1, %c0_i32 : i32
    %3 = arith.extui %2 : i1 to i32
    %c0_i32_3 = arith.constant 0 : i32
    %4 = arith.cmpi ne, %3, %c0_i32_3 : i32
    scf.if %4 {
      %c0_64 = arith.constant 0 : index
      %c0_65 = arith.constant 0 : index
      %c0_66 = arith.constant 0 : index
      %109 = vector.load %arg3[%c0_64, %c0_65, %c0_66] : memref<1x8x32xf32, #tpu.memory_space<vmem>>, vector<1x8x32xf32>
      %110 = vector.shape_cast %109 : vector<1x8x32xf32> to vector<8x32xf32>
      %cst_67 = arith.constant dense<0.000000e+00> : vector<8xf32>
      %111 = vector.multi_reduction <add>, %110, %cst_67 [1] : vector<8x32xf32> to vector<8xf32>
      %112 = vector.shape_cast %111 : vector<8xf32> to vector<8x1xf32>
      %cst_68 = arith.constant 3.200000e+01 : f32
      %113 = vector.broadcast %cst_68 : f32 to vector<8x1xf32>
      %114 = arith.divf %112, %113 : vector<8x1xf32>
      %115 = vector.broadcast %114 : vector<8x1xf32> to vector<8x32xf32>
      %116 = arith.subf %110, %115 : vector<8x32xf32>
      %117 = arith.mulf %116, %116 : vector<8x32xf32>
      %cst_69 = arith.constant dense<0.000000e+00> : vector<8xf32>
      %118 = vector.multi_reduction <add>, %117, %cst_69 [1] : vector<8x32xf32> to vector<8xf32>
      %119 = vector.shape_cast %118 : vector<8xf32> to vector<8x1xf32>
      %cst_70 = arith.constant 3.200000e+01 : f32
      %120 = vector.broadcast %cst_70 : f32 to vector<8x1xf32>
      %121 = arith.divf %119, %120 : vector<8x1xf32>
      %122 = vector.broadcast %114 : vector<8x1xf32> to vector<8x32xf32>
      %123 = arith.subf %110, %122 : vector<8x32xf32>
      %cst_71 = arith.constant 9.99999997E-7 : f32
      %124 = vector.broadcast %cst_71 : f32 to vector<8x1xf32>
      %125 = arith.addf %121, %124 : vector<8x1xf32>
      %126 = math.sqrt %125 : vector<8x1xf32>
      %127 = vector.broadcast %126 : vector<8x1xf32> to vector<8x32xf32>
      %128 = arith.divf %123, %127 : vector<8x32xf32>
      %129 = vector.broadcast %0 : vector<1x32xf32> to vector<8x32xf32>
      %130 = arith.mulf %128, %129 : vector<8x32xf32>
      %131 = vector.broadcast %1 : vector<1x32xf32> to vector<8x32xf32>
      %132 = arith.addf %130, %131 : vector<8x32xf32>
      %c0_72 = arith.constant 0 : index
      %c0_73 = arith.constant 0 : index
      %133 = vector.load %arg8[%c0_72, %c0_73] : memref<32x64xf32, #tpu.memory_space<vmem>>, vector<32x64xf32>
      %cst_74 = arith.constant dense<0.000000e+00> : vector<8x64xf32>
      %134 = tpu.matmul %132, %133, %cst_74 {dimension_numbers = #tpu.dot_dimension_numbers<[1], [0], [0], [1], [0, 0, 1, 1], [], []>} : vector<8x32xf32>, vector<32x64xf32>, vector<8x64xf32> -> vector<8x64xf32>
      %c0_75 = arith.constant 0 : index
      %c0_76 = arith.constant 0 : index
      %135 = vector.load %arg9[%c0_75, %c0_76] : memref<1x64xf32, #tpu.memory_space<vmem>>, vector<1x64xf32>
      %136 = vector.broadcast %135 : vector<1x64xf32> to vector<8x64xf32>
      %137 = arith.addf %134, %136 : vector<8x64xf32>
      %c0_77 = arith.constant 0 : index
      %c0_78 = arith.constant 0 : index
      %138 = vector.load %arg13[%c0_77, %c0_78] : memref<8x64xf32, #tpu.memory_space<vmem>>, vector<8x64xf32>
      tpu.vector_store %arg13[%c0_77, %c0_78], %137 {strides = array<i32>} : memref<8x64xf32, #tpu.memory_space<vmem>>, vector<8x64xf32>,
    } else {
    }
    %c0_4 = arith.constant 0 : index
    %c0_5 = arith.constant 0 : index
    %c0_6 = arith.constant 0 : index
    %5 = vector.load %arg2[%c0_4, %c0_5, %c0_6] : memref<1x8x32xf32, #tpu.memory_space<vmem>>, vector<1x8x32xf32>
    %6 = vector.shape_cast %5 : vector<1x8x32xf32> to vector<8x32xf32>
    %cst = arith.constant dense<0.000000e+00> : vector<8xf32>
    %7 = vector.multi_reduction <add>, %6, %cst [1] : vector<8x32xf32> to vector<8xf32>
    %8 = vector.shape_cast %7 : vector<8xf32> to vector<8x1xf32>
    %cst_7 = arith.constant 3.200000e+01 : f32
    %9 = vector.broadcast %cst_7 : f32 to vector<8x1xf32>
    %10 = arith.divf %8, %9 : vector<8x1xf32>
    %11 = vector.broadcast %10 : vector<8x1xf32> to vector<8x32xf32>
    %12 = arith.subf %6, %11 : vector<8x32xf32>
    %13 = arith.mulf %12, %12 : vector<8x32xf32>
    %cst_8 = arith.constant dense<0.000000e+00> : vector<8xf32>
    %14 = vector.multi_reduction <add>, %13, %cst_8 [1] : vector<8x32xf32> to vector<8xf32>
    %15 = vector.shape_cast %14 : vector<8xf32> to vector<8x1xf32>
    %cst_9 = arith.constant 3.200000e+01 : f32
    %16 = vector.broadcast %cst_9 : f32 to vector<8x1xf32>
    %17 = arith.divf %15, %16 : vector<8x1xf32>
    %18 = vector.broadcast %10 : vector<8x1xf32> to vector<8x32xf32>
    %19 = arith.subf %6, %18 : vector<8x32xf32>
    %cst_10 = arith.constant 9.99999997E-7 : f32
    %20 = vector.broadcast %cst_10 : f32 to vector<8x1xf32>
    %21 = arith.addf %17, %20 : vector<8x1xf32>
    %22 = math.sqrt %21 : vector<8x1xf32>
    %23 = vector.broadcast %22 : vector<8x1xf32> to vector<8x32xf32>
    %24 = arith.divf %19, %23 : vector<8x32xf32>
    %25 = vector.broadcast %0 : vector<1x32xf32> to vector<8x32xf32>
    %26 = arith.mulf %24, %25 : vector<8x32xf32>
    %27 = vector.broadcast %1 : vector<1x32xf32> to vector<8x32xf32>
    %28 = arith.addf %26, %27 : vector<8x32xf32>
    %c0_11 = arith.constant 0 : index
    %c0_12 = arith.constant 0 : index
    %29 = vector.load %arg6[%c0_11, %c0_12] : memref<32x32xf32, #tpu.memory_space<vmem>>, vector<32x32xf32>
    %cst_13 = arith.constant dense<0.000000e+00> : vector<8x32xf32>
    %30 = tpu.matmul %28, %29, %cst_13 {dimension_numbers = #tpu.dot_dimension_numbers<[1], [0], [0], [1], [0, 0, 1, 1], [], []>} : vector<8x32xf32>, vector<32x32xf32>, vector<8x32xf32> -> vector<8x32xf32>
    %c0_14 = arith.constant 0 : index
    %c0_15 = arith.constant 0 : index
    %31 = vector.load %arg7[%c0_14, %c0_15] : memref<1x32xf32, #tpu.memory_space<vmem>>, vector<1x32xf32>
    %32 = vector.broadcast %31 : vector<1x32xf32> to vector<8x32xf32>
    %33 = arith.addf %30, %32 : vector<8x32xf32>
    %cst_16 = arith.constant 0.353553385 : f32
    %34 = vector.broadcast %cst_16 : f32 to vector<8x32xf32>
    %35 = arith.mulf %33, %34 : vector<8x32xf32>
    %c0_17 = arith.constant 0 : index
    %c0_18 = arith.constant 0 : index
    %36 = vector.load %arg14[%c0_17, %c0_18] : memref<8x32xf32, #tpu.memory_space<vmem>>, vector<8x32xf32>
    tpu.vector_store %arg14[%c0_17, %c0_18], %35 {strides = array<i32>} : memref<8x32xf32, #tpu.memory_space<vmem>>, vector<8x32xf32>,
    %c0_19 = arith.constant 0 : index
    %c0_20 = arith.constant 0 : index
    %37 = vector.load %arg14[%c0_19, %c0_20] : memref<8x32xf32, #tpu.memory_space<vmem>>, vector<8x8xf32>
    %c0_21 = arith.constant 0 : index
    %c0_22 = arith.constant 0 : index
    %38 = vector.load %arg13[%c0_21, %c0_22] : memref<8x64xf32, #tpu.memory_space<vmem>>, vector<8x8xf32>
    %c0_23 = arith.constant 0 : index
    %c32 = arith.constant 32 : index
    %39 = vector.load %arg13[%c0_23, %c32] : memref<8x64xf32, #tpu.memory_space<vmem>>, vector<8x8xf32>
    %cst_24 = arith.constant dense<0.000000e+00> : vector<8x8xf32>
    %40 = tpu.matmul %37, %38, %cst_24 {dimension_numbers = #tpu.dot_dimension_numbers<[1], [1], [0], [0], [0, 0, 1, 0], [], []>} : vector<8x8xf32>, vector<8x8xf32>, vector<8x8xf32> -> vector<8x8xf32>
    %cst_25 = arith.constant dense<0xFF800000> : vector<8xf32>
    %41 = vector.multi_reduction <maximumf>, %40, %cst_25 [1] : vector<8x8xf32> to vector<8xf32>
    %42 = vector.shape_cast %41 : vector<8xf32> to vector<8x1xf32>
    %43 = vector.broadcast %42 : vector<8x1xf32> to vector<8x8xf32>
    %44 = arith.subf %40, %43 : vector<8x8xf32>
    %45 = math.exp %44 : vector<8x8xf32>
    %cst_26 = arith.constant dense<0.000000e+00> : vector<8xf32>
    %46 = vector.multi_reduction <add>, %45, %cst_26 [1] : vector<8x8xf32> to vector<8xf32>
    %47 = vector.shape_cast %46 : vector<8xf32> to vector<8x1xf32>
    %48 = tpu.reciprocal %47 {approx = true} : vector<8x1xf32> -> vector<8x1xf32>
    %49 = vector.broadcast %48 : vector<8x1xf32> to vector<8x8xf32>
    %50 = arith.mulf %45, %49 : vector<8x8xf32>
    %cst_27 = arith.constant dense<0.000000e+00> : vector<8x8xf32>
    %51 = tpu.matmul %50, %39, %cst_27 {dimension_numbers = #tpu.dot_dimension_numbers<[1], [0], [0], [1], [0, 0, 1, 1], [], []>} : vector<8x8xf32>, vector<8x8xf32>, vector<8x8xf32> -> vector<8x8xf32>
    %c0_28 = arith.constant 0 : index
    %c8 = arith.constant 8 : index
    %52 = vector.load %arg14[%c0_28, %c8] : memref<8x32xf32, #tpu.memory_space<vmem>>, vector<8x8xf32>
    %c0_29 = arith.constant 0 : index
    %c8_30 = arith.constant 8 : index
    %53 = vector.load %arg13[%c0_29, %c8_30] : memref<8x64xf32, #tpu.memory_space<vmem>>, vector<8x8xf32>
    %c0_31 = arith.constant 0 : index
    %c40 = arith.constant 40 : index
    %54 = vector.load %arg13[%c0_31, %c40] : memref<8x64xf32, #tpu.memory_space<vmem>>, vector<8x8xf32>
    %cst_32 = arith.constant dense<0.000000e+00> : vector<8x8xf32>
    %55 = tpu.matmul %52, %53, %cst_32 {dimension_numbers = #tpu.dot_dimension_numbers<[1], [1], [0], [0], [0, 0, 1, 0], [], []>} : vector<8x8xf32>, vector<8x8xf32>, vector<8x8xf32> -> vector<8x8xf32>
    %cst_33 = arith.constant dense<0xFF800000> : vector<8xf32>
    %56 = vector.multi_reduction <maximumf>, %55, %cst_33 [1] : vector<8x8xf32> to vector<8xf32>
    %57 = vector.shape_cast %56 : vector<8xf32> to vector<8x1xf32>
    %58 = vector.broadcast %57 : vector<8x1xf32> to vector<8x8xf32>
    %59 = arith.subf %55, %58 : vector<8x8xf32>
    %60 = math.exp %59 : vector<8x8xf32>
    %cst_34 = arith.constant dense<0.000000e+00> : vector<8xf32>
    %61 = vector.multi_reduction <add>, %60, %cst_34 [1] : vector<8x8xf32> to vector<8xf32>
    %62 = vector.shape_cast %61 : vector<8xf32> to vector<8x1xf32>
    %63 = tpu.reciprocal %62 {approx = true} : vector<8x1xf32> -> vector<8x1xf32>
    %64 = vector.broadcast %63 : vector<8x1xf32> to vector<8x8xf32>
    %65 = arith.mulf %60, %64 : vector<8x8xf32>
    %cst_35 = arith.constant dense<0.000000e+00> : vector<8x8xf32>
    %66 = tpu.matmul %65, %54, %cst_35 {dimension_numbers = #tpu.dot_dimension_numbers<[1], [0], [0], [1], [0, 0, 1, 1], [], []>} : vector<8x8xf32>, vector<8x8xf32>, vector<8x8xf32> -> vector<8x8xf32>
    %c0_36 = arith.constant 0 : index
    %c16 = arith.constant 16 : index
    %67 = vector.load %arg14[%c0_36, %c16] : memref<8x32xf32, #tpu.memory_space<vmem>>, vector<8x8xf32>
    %c0_37 = arith.constant 0 : index
    %c16_38 = arith.constant 16 : index
    %68 = vector.load %arg13[%c0_37, %c16_38] : memref<8x64xf32, #tpu.memory_space<vmem>>, vector<8x8xf32>
    %c0_39 = arith.constant 0 : index
    %c48 = arith.constant 48 : index
    %69 = vector.load %arg13[%c0_39, %c48] : memref<8x64xf32, #tpu.memory_space<vmem>>, vector<8x8xf32>
    %cst_40 = arith.constant dense<0.000000e+00> : vector<8x8xf32>
    %70 = tpu.matmul %67, %68, %cst_40 {dimension_numbers = #tpu.dot_dimension_numbers<[1], [1], [0], [0], [0, 0, 1, 0], [], []>} : vector<8x8xf32>, vector<8x8xf32>, vector<8x8xf32> -> vector<8x8xf32>
    %cst_41 = arith.constant dense<0xFF800000> : vector<8xf32>
    %71 = vector.multi_reduction <maximumf>, %70, %cst_41 [1] : vector<8x8xf32> to vector<8xf32>
    %72 = vector.shape_cast %71 : vector<8xf32> to vector<8x1xf32>
    %73 = vector.broadcast %72 : vector<8x1xf32> to vector<8x8xf32>
    %74 = arith.subf %70, %73 : vector<8x8xf32>
    %75 = math.exp %74 : vector<8x8xf32>
    %cst_42 = arith.constant dense<0.000000e+00> : vector<8xf32>
    %76 = vector.multi_reduction <add>, %75, %cst_42 [1] : vector<8x8xf32> to vector<8xf32>
    %77 = vector.shape_cast %76 : vector<8xf32> to vector<8x1xf32>
    %78 = tpu.reciprocal %77 {approx = true} : vector<8x1xf32> -> vector<8x1xf32>
    %79 = vector.broadcast %78 : vector<8x1xf32> to vector<8x8xf32>
    %80 = arith.mulf %75, %79 : vector<8x8xf32>
    %cst_43 = arith.constant dense<0.000000e+00> : vector<8x8xf32>
    %81 = tpu.matmul %80, %69, %cst_43 {dimension_numbers = #tpu.dot_dimension_numbers<[1], [0], [0], [1], [0, 0, 1, 1], [], []>} : vector<8x8xf32>, vector<8x8xf32>, vector<8x8xf32> -> vector<8x8xf32>
    %c0_44 = arith.constant 0 : index
    %c24 = arith.constant 24 : index
    %82 = vector.load %arg14[%c0_44, %c24] : memref<8x32xf32, #tpu.memory_space<vmem>>, vector<8x8xf32>
    %c0_45 = arith.constant 0 : index
    %c24_46 = arith.constant 24 : index
    %83 = vector.load %arg13[%c0_45, %c24_46] : memref<8x64xf32, #tpu.memory_space<vmem>>, vector<8x8xf32>
    %c0_47 = arith.constant 0 : index
    %c56 = arith.constant 56 : index
    %84 = vector.load %arg13[%c0_47, %c56] : memref<8x64xf32, #tpu.memory_space<vmem>>, vector<8x8xf32>
    %cst_48 = arith.constant dense<0.000000e+00> : vector<8x8xf32>
    %85 = tpu.matmul %82, %83, %cst_48 {dimension_numbers = #tpu.dot_dimension_numbers<[1], [1], [0], [0], [0, 0, 1, 0], [], []>} : vector<8x8xf32>, vector<8x8xf32>, vector<8x8xf32> -> vector<8x8xf32>
    %cst_49 = arith.constant dense<0xFF800000> : vector<8xf32>
    %86 = vector.multi_reduction <maximumf>, %85, %cst_49 [1] : vector<8x8xf32> to vector<8xf32>
    %87 = vector.shape_cast %86 : vector<8xf32> to vector<8x1xf32>
    %88 = vector.broadcast %87 : vector<8x1xf32> to vector<8x8xf32>
    %89 = arith.subf %85, %88 : vector<8x8xf32>
    %90 = math.exp %89 : vector<8x8xf32>
    %cst_50 = arith.constant dense<0.000000e+00> : vector<8xf32>
    %91 = vector.multi_reduction <add>, %90, %cst_50 [1] : vector<8x8xf32> to vector<8xf32>
    %92 = vector.shape_cast %91 : vector<8xf32> to vector<8x1xf32>
    %93 = tpu.reciprocal %92 {approx = true} : vector<8x1xf32> -> vector<8x1xf32>
    %94 = vector.broadcast %93 : vector<8x1xf32> to vector<8x8xf32>
    %95 = arith.mulf %90, %94 : vector<8x8xf32>
    %cst_51 = arith.constant dense<0.000000e+00> : vector<8x8xf32>
    %96 = tpu.matmul %95, %84, %cst_51 {dimension_numbers = #tpu.dot_dimension_numbers<[1], [0], [0], [1], [0, 0, 1, 1], [], []>} : vector<8x8xf32>, vector<8x8xf32>, vector<8x8xf32> -> vector<8x8xf32>
    %97 = tpu.concatenate %51, %66, %81, %96 in 1 : vector<8x8xf32>, vector<8x8xf32>, vector<8x8xf32>, vector<8x8xf32> -> vector<8x32xf32>
    %c0_52 = arith.constant 0 : index
    %c0_53 = arith.constant 0 : index
    %98 = vector.load %arg15[%c0_52, %c0_53] : memref<8x32xf32, #tpu.memory_space<vmem>>, vector<8x32xf32>
    tpu.vector_store %arg15[%c0_52, %c0_53], %97 {strides = array<i32>} : memref<8x32xf32, #tpu.memory_space<vmem>>, vector<8x32xf32>,
    %c0_54 = arith.constant 0 : index
    %c0_55 = arith.constant 0 : index
    %99 = vector.load %arg15[%c0_54, %c0_55] : memref<8x32xf32, #tpu.memory_space<vmem>>, vector<8x32xf32>
    %c0_56 = arith.constant 0 : index
    %c0_57 = arith.constant 0 : index
    %100 = vector.load %arg10[%c0_56, %c0_57] : memref<32x32xf32, #tpu.memory_space<vmem>>, vector<32x32xf32>
    %cst_58 = arith.constant dense<0.000000e+00> : vector<8x32xf32>
    %101 = tpu.matmul %99, %100, %cst_58 {dimension_numbers = #tpu.dot_dimension_numbers<[1], [0], [0], [1], [0, 0, 1, 1], [], []>} : vector<8x32xf32>, vector<32x32xf32>, vector<8x32xf32> -> vector<8x32xf32>
    %c0_59 = arith.constant 0 : index
    %c0_60 = arith.constant 0 : index
    %102 = vector.load %arg11[%c0_59, %c0_60] : memref<1x32xf32, #tpu.memory_space<vmem>>, vector<1x32xf32>
    %103 = vector.broadcast %102 : vector<1x32xf32> to vector<8x32xf32>
    %104 = arith.addf %101, %103 : vector<8x32xf32>
    %105 = arith.addf %104, %6 : vector<8x32xf32>
    %c0_61 = arith.constant 0 : index
    %c0_62 = arith.constant 0 : index
    %c0_63 = arith.constant 0 : index
    %106 = vector.load %arg12[%c0_61, %c0_62, %c0_63] : memref<1x8x32xf32, #tpu.memory_space<vmem>>, vector<1x8x32xf32>
    %107 = vector.shape_cast %106 : vector<1x8x32xf32> to vector<8x32xf32>
    %108 = vector.shape_cast %105 : vector<8x32xf32> to vector<1x8x32xf32>
    tpu.vector_store %arg12[%c0_61, %c0_62, %c0_63], %108 {strides = array<i32>} : memref<1x8x32xf32, #tpu.memory_space<vmem>>, vector<1x8x32xf32>,
    return
  }
  func.func @transform_0(%arg0: i32, %arg1: i32) -> (i32, i32, i32) {
    %c0_i32 = arith.constant 0 : i32
    %c0_i32_0 = arith.constant 0 : i32
    return %arg0, %arg1, %c0_i32 : i32, i32, i32
  }
  func.func @transform_1(%arg0: i32, %arg1: i32) -> (i32, i32, i32) {
    %c0_i32 = arith.constant 0 : i32
    %c0_i32_0 = arith.constant 0 : i32
    %c0_i32_1 = arith.constant 0 : i32
    return %arg0, %c0_i32, %c0_i32_0 : i32, i32, i32
  }
  func.func @transform_2(%arg0: i32, %arg1: i32) -> (i32, i32) {
    %c0_i32 = arith.constant 0 : i32
    %c0_i32_0 = arith.constant 0 : i32
    %c0_i32_1 = arith.constant 0 : i32
    return %c0_i32, %c0_i32_0 : i32, i32
  }
  func.func @transform_3(%arg0: i32, %arg1: i32) -> (i32, i32) {
    %c0_i32 = arith.constant 0 : i32
    %c0_i32_0 = arith.constant 0 : i32
    %c0_i32_1 = arith.constant 0 : i32
    return %c0_i32, %c0_i32_0 : i32, i32
  }
  func.func @transform_4(%arg0: i32, %arg1: i32) -> (i32, i32) {
    %c0_i32 = arith.constant 0 : i32
    %c0_i32_0 = arith.constant 0 : i32
    %c0_i32_1 = arith.constant 0 : i32
    return %c0_i32, %c0_i32_0 : i32, i32
  }
  func.func @transform_5(%arg0: i32, %arg1: i32) -> (i32, i32) {
    %c0_i32 = arith.constant 0 : i32
    %c0_i32_0 = arith.constant 0 : i32
    %c0_i32_1 = arith.constant 0 : i32
    return %c0_i32, %c0_i32_0 : i32, i32
  }
  func.func @transform_6(%arg0: i32, %arg1: i32) -> (i32, i32) {
    %c0_i32 = arith.constant 0 : i32
    %c0_i32_0 = arith.constant 0 : i32
    %c0_i32_1 = arith.constant 0 : i32
    return %c0_i32, %c0_i32_0 : i32, i32
  }
  func.func @transform_7(%arg0: i32, %arg1: i32) -> (i32, i32) {
    %c0_i32 = arith.constant 0 : i32
    %c0_i32_0 = arith.constant 0 : i32
    %c0_i32_1 = arith.constant 0 : i32
    return %c0_i32, %c0_i32_0 : i32, i32
  }
  func.func @transform_8(%arg0: i32, %arg1: i32) -> (i32, i32) {
    %c0_i32 = arith.constant 0 : i32
    %c0_i32_0 = arith.constant 0 : i32
    %c0_i32_1 = arith.constant 0 : i32
    return %c0_i32, %c0_i32_0 : i32, i32
  }
  func.func @transform_9(%arg0: i32, %arg1: i32) -> (i32, i32) {
    %c0_i32 = arith.constant 0 : i32
    %c0_i32_0 = arith.constant 0 : i32
    %c0_i32_1 = arith.constant 0 : i32
    return %c0_i32, %c0_i32_0 : i32, i32
  }
  func.func @transform_10(%arg0: i32, %arg1: i32) -> (i32, i32, i32) {
    %c0_i32 = arith.constant 0 : i32
    %c0_i32_0 = arith.constant 0 : i32
    return %arg0, %arg1, %c0_i32 : i32, i32, i32
  }
}

</mosaic_0001>

<bundles_post_ra>
// kernel: tpu_custom_call.1
= control target key start
LH: loop header
LB: loop body
LE: loop exit
PB: predicated region body
PF: predicated region fallthrough
CT: control target
= control target key end

     0   :  { %s2541_s0 = inlined_call_operand.hbm [shape: f32[2,8,32], index: 0, kind: input, shape index: {}]   ;;  %s2542_s1 = inlined_call_operand.hbm [shape: f32[2,8,32], index: 1, kind: input, shape index: {}]   ;;  %s2543_s2 = inlined_call_operand.vmem [shape: f32[1,32], index: 2, kind: input, shape index: {}]   ;;  %s2544_s3 = inlined_call_operand.vmem [shape: f32[1,32], index: 3, kind: input, shape index: {}]   ;;  %s2545_s4 = inlined_call_operand.hbm [shape: f32[32,32], index: 4, kind: input, shape index: {}]   ;;  %s2546_s5 = inlined_call_operand.vmem [shape: f32[1,32], index: 5, kind: input, shape index: {}]   ;;  %s2547_s6 = inlined_call_operand.hbm [shape: f32[32,64], index: 6, kind: input, shape index: {}]   ;;  %s2548_s7 = inlined_call_operand.vmem [shape: f32[1,64], index: 7, kind: input, shape index: {}]   ;;  %s2549_s8 = inlined_call_operand.hbm [shape: f32[32,32], index: 8, kind: input, shape index: {}]   ;;  %s2550_s9 = inlined_call_operand.vmem [shape: f32[1,32], index: 9, kind: input, shape index: {}]   ;;  %s2551_s10 = inlined_call_operand.hbm [shape: f32[2,8,32], index: 10, kind: output, shape index: {}]  }
   0x1   :  { %2558 = sst [smem:[#allocation23_spill]] %s2541_s0 }
   0x2   :  { %2559 = sst [smem:[#allocation24_spill]] %s2545_s4 }
   0x3   :  { %2560 = sst [smem:[#allocation25_spill]] %s2547_s6 }
   0x4   :  { %2561 = sst [smem:[#allocation26_spill]] %s2549_s8 }
   0x5   :  { %2562 = sst [smem:[#allocation27_spill]] %s2551_s10 }
   0x6   :  { %15 = vsyncpa [#allocation6], 0 }
   0x7   :  { %17 = vsyncpa [#allocation6 + $0x1], 0 }
   0x8   :  { %18 = vsyncpa [#allocation9], 0 }
   0x9   :  { %20 = vsyncpa [#allocation9 + $0x1], 0 }
   0xa   :  { %21 = vsyncpa [#allocation12], 0 }
   0xb   :  { %22 = vsyncpa [#allocation7], 0 }
   0xc   :  { %24 = vsyncpa [#allocation7 + $0x1], 0  ;;  %s2221_s13 = smov 0   ;;  %s2223_s14 = smov 0  }
   0xd   :  { %s2225_s15 = smov 0   ;;  %s2227_s16 = smov 0  }
   0xe   :  { %s2229_s17 = smov 0   ;;  %s2231_s18 = smov 0  }
   0xf LB: > { %2563 = sst [smem:[#allocation20_spill]] %s2124_s13  ;;  %s2252_s19 = sadd.s32 4294967295, %s2144_s18   ;;  %s2144_s18 = sphi %s2231_s18, %s30_s18   ;;  %s2140_s17 = sphi %s2229_s17, %s2592_s17   ;;  %s2136_s16 = sphi %s2227_s16, %s2591_s16   ;;  %s2132_s15 = sphi %s2225_s15, %s2590_s15   ;;  %s2128_s14 = sphi %s2223_s14, %s2589_s14   ;;  %s2124_s13 = sphi %s2221_s13, %s2588_s13  }
  0x10   : > { %s1637_s20 = sadd.s32 4294967294, %s2144_s18   ;;  %p64_p0 = scmp.ne.s32.totalorder %s2128_s14, %s2124_s13 }
  0x11   : > { %p2552_p1 = scmp.eq.s32.totalorder %s2252_s19, 0  ;;  %p290_p3 = scmp.eq.s32.totalorder %s1637_s20, 1 }
  0x12   : > { %p1638_p5 = scmp.ge.s32.totalorder %s2144_s18, 1  ;;  %p297_p7 = scmp.lt.s32.totalorder %s2144_s18, 3 }
  0x13   : > { %p2261_p4 = por %p2552_p1, %p64_p0  ;;  %p2266_p6 = por %p290_p3, %p64_p0 }
  0x14   : > { %p2271_p8 = pnand %p1638_p5, %p297_p7  ;;  %s2146_s24 = smov [#allocation10]  }
  0x15   : > { %s2564_s21 = scalar_select %p2261_p4, 1, 0 }
  0x16   : > { %s2565_s22 = scalar_select %p2266_p6, 1, 0 }
  0x17   : > { %s315_s25 = sshll.u32 %s2146_s24, 4  ;;  %p1800_p9 = pneg %p2271_p8  ;;  %s316_s25 = int_to_ptr.vmem [resolvable:$true] %s315_s25 }
  0x18   : > { %2566 = sst [smem:[#allocation21_spill]] %s2565_s22  ;;  %s2147_s27 = smov [#allocation11]  }
  0x19   : > { %p2280_p11 = pnand %p1800_p9, %p2552_p1  ;;  %s331_s28 = sshll.u32 %s2147_s27, 4  ;;  %s332_s28 = int_to_ptr.vmem [resolvable:$true] %s331_s28 }
  0x1a   : > { %s2148_s29 = smov [#allocation13]   ;;  %s1929_s11 = scalar_lea.vmem %s316_s25, 512 }
  0x1b   : > { %s347_s30 = sshll.u32 %s2148_s29, 4  ;;  %p1920_p12 = pneg %p2280_p11  ;;  %s348_s30 = int_to_ptr.vmem [resolvable:$true] %s347_s30 }
  0x1c   : > { %p1930_p13 = scmp.ne.s32.totalorder %s316_s25, %s1929_s11  ;;  %p1937_p5 = scmp.lt.s32.totalorder %s316_s25, %s316_s25 }
  0x1d   : > { %p1938_p7 = scmp.lt.s32.totalorder %s1929_s11, %s1929_s11 }
  0x1e   : > { %p1932_p0 = pnand %p1930_p13, %p1920_p12 }
  0x1f   : > { %p1939_p9 = por %p1938_p7, %p1937_p5 }
  0x20   : > { %p1933_p3 = pneg %p1932_p0 }
  0x22   : > { %p1940_p10 = pnand %p1939_p9, %p1933_p3 }
  0x24   : > { %1943 = shalt.err (!%p1940_p10)
}
  0x25   : > { %s2149_s12 = smov 128   ;;  %s2150_s20 = smov 8  }
  0x26   : > { %s2569_s4 = sld [smem:[#allocation24_spill]]  ;;  %s1955_s29 = scalar_lea.vmem %s332_s28, 512 }
  0x27   : > { %p1956_p1 = scmp.ne.s32.totalorder %s332_s28, %s1955_s29  ;;  %p1963_p2 = scmp.lt.s32.totalorder %s332_s28, %s332_s28 }
  0x28   : > { %p1964_p6 = scmp.lt.s32.totalorder %s1955_s29, %s1955_s29 }
  0x29   : > { %p1958_p13 = pnand %p1956_p1, %p1920_p12 }
  0x2a   : > { %p1965_p5 = por %p1964_p6, %p1963_p2 }
  0x2b   : > { %p1959_p0 = pneg %p1958_p13 }
  0x2c   : > { %1803 = dma.hbm_to_vmem [thread:$0]  (!%p2280_p11), %s2569_s4, 512, %s316_s25, [#allocation9], %s2149_s12, %s2149_s12, %s2150_s20  }
  0x2d   : > { %p1966_p3 = pnand %p1965_p5, %p1959_p0 }
  0x2f   : > { %1969 = shalt.err (!%p1966_p3)
}
  0x30   : > { %s2570_s6 = sld [smem:[#allocation25_spill]]  ;;  %s1981_s25 = scalar_lea.vmem %s348_s30, 512 }
  0x31   : > { %p1982_p10 = scmp.ne.s32.totalorder %s348_s30, %s1981_s25  ;;  %p1989_p9 = scmp.lt.s32.totalorder %s348_s30, %s348_s30 }
  0x32   : > { %p1990_p13 = scmp.lt.s32.totalorder %s1981_s25, %s1981_s25 }
  0x33   : > { %p1984_p7 = pnand %p1982_p10, %p1920_p12 }
  0x34   : > { %p1991_p4 = por %p1990_p13, %p1989_p9 }
  0x35   : > { %p1985_p1 = pneg %p1984_p7 }
  0x36   : > { %1806 = dma.hbm_to_vmem [thread:$0]  (!%p2280_p11), %s2570_s6, 512, %s332_s28, [#allocation12], %s2149_s12, %s2149_s12, %s2150_s20  }
  0x37   : > { %p1992_p2 = pnand %p1991_p4, %p1985_p1 }
  0x39   : > { %1995 = shalt.err (!%p1992_p2)
}
  0x3a   : > { %s2571_s8 = sld [smem:[#allocation26_spill]]  ;;  %s51_s22 = sadd.s32 1, %s2132_s15 }
  0x3b   : > { %s42_s28 = sadd.s32 1, %s2140_s17  ;;  %p58_p4 = scmp.ne.s32.totalorder %s2132_s15, %s2128_s14 }
  0x3c   : > { %p44_p6 = scmp.ge.s32.totalorder %s42_s28, 2  ;;  %p59_p12 = scmp.eq.s32.totalorder %s2144_s18, 0 }
  0x3d   : > { %p2572_p0 = scmp.eq.s32.totalorder %s2252_s19, 1  ;;  %p1824_p3 = scmp.lt.s32.totalorder %s2144_s18, 2 }
  0x3e   : > { %s2594_s28 = smov (%p44_p6, %s42_s28), 0  ;;  %p60_p10 = por %p59_p12, %p58_p4 }
  0x3f   : > { %p2317_p5 = por %p2572_p0, %p58_p4  ;;  %2574 = sst [smem:[#allocation22_spill]] %s2594_s28 }
  0x40   : > { %1809 = dma.hbm_to_vmem [thread:$0]  (!%p2280_p11), %s2571_s8, 512, %s348_s30, [#allocation12], %s2149_s12, %s2149_s12, %s2150_s20  }
  0x41   : > { %s364_s29 = sand.u32 1, %s2132_s15   ;;  %s46_s11 = ssub.s32 %s2140_s17, %s2594_s28 }
  0x42   : > { %p49_p11 = scmp.eq.s32.totalorder %s46_s11, 0  ;;  %s1643_s30 = sshll.u32 %s364_s29, 3 }
  0x43   : > { %s1644_s12 = sshll.u32 %s2140_s17, 7  ;;  %s2575_s0 = sld [smem:[#allocation23_spill]] }
  0x44   : > { %s2329_s20 = scalar_select %p49_p11, %s2132_s15, %s51_s22  }
  0x45   : > { %s368_s4 = scalar_lea.vmem [#allocation5], %s1643_s30  ;;  %p2336_p7 = pnand %p1824_p3, %p60_p10 }
  0x46   : > { %s376_s6 = sshll.u32 %s368_s4, 4  ;;  %s2343_s11 = scalar_lea.hbm %s2542_s1, %s1644_s12  ;;  %s377_s6 = int_to_ptr.vmem [resolvable:$true] %s376_s6 }
  0x47   : > { %s383_s22 = sand.u32 1, %s2144_s18   ;;  %s365_s28 = scalar_lea.sflag [#allocation6], %s364_s29 }
  0x48   : > { %p1998_p1 = pneg %p2336_p7  ;;  %s2009_s25 = scalar_lea.vmem %s377_s6, 128 }
  0x49   : > { %s374_s27 = scalar_lea.hbm %s2575_s0, %s1644_s12  ;;  %p2010_p9 = scmp.ne.s32.totalorder %s377_s6, %s2009_s25 }
  0x4a   : > { %s2151_s4 = smov [#allocation5]  }
  0x4b   : > { %p2012_p13 = pnand %p2010_p9, %p1998_p1  ;;  %s2014_s24 = sshll.u32 %s2151_s4, 4  ;;  %s2015_s24 = int_to_ptr.vmem [resolvable:$false] %s2014_s24 }
  0x4c   : > { %s2016_s0 = scalar_lea.vmem %s2015_s24, 256  ;;  %p2017_p4 = scmp.lt.s32.totalorder %s377_s6, %s2015_s24 }
  0x4d   : > { %p2013_p2 = pneg %p2012_p13  ;;  %p2018_p6 = scmp.lt.s32.totalorder %s2016_s0, %s2009_s25 }
  0x4f   : > { %p2019_p12 = por %p2018_p6, %p2017_p4 }
  0x51   : > { %p2020_p0 = pnand %p2019_p12, %p2013_p2 }
  0x53   : > { %2023 = shalt.err (!%p2020_p0)
}
  0x54   : > { %1813 = dma.hbm_to_vmem [thread:$0]  (!%p2336_p7), %s374_s27, 128, %s377_s6, %s365_s28  }
  0x55   : > { %s387_s10 = scalar_lea.vmem [#allocation8], %s1643_s30  ;;  %s384_s29 = scalar_lea.sflag [#allocation9], %s383_s22 }
  0x56   : > { %s394_s13 = sshll.u32 %s387_s10, 4  ;;  %s2152_s4 = smov [#allocation8]   ;;  %s395_s13 = int_to_ptr.vmem [resolvable:$true] %s394_s13 }
  0x57   : > { %s2037_s12 = scalar_lea.vmem %s395_s13, 128  ;;  %s2042_s24 = sshll.u32 %s2152_s4, 4  ;;  %s2043_s24 = int_to_ptr.vmem [resolvable:$false] %s2042_s24 }
  0x58   : > { %p2038_p3 = scmp.ne.s32.totalorder %s395_s13, %s2037_s12  ;;  %s2044_s0 = scalar_lea.vmem %s2043_s24, 256 }
  0x59   : > { %p2045_p9 = scmp.lt.s32.totalorder %s395_s13, %s2043_s24  ;;  %p2046_p13 = scmp.lt.s32.totalorder %s2044_s0, %s2037_s12 }
  0x5a   : > { %p2040_p10 = pnand %p2038_p3, %p1998_p1 }
  0x5b   : > { %p2047_p2 = por %p2046_p13, %p2045_p9 }
  0x5c   : > { %p2041_p11 = pneg %p2040_p10 }
  0x5e   : > { %p2048_p4 = pnand %p2047_p2, %p2041_p11 }
  0x60   : > { %2051 = shalt.err (!%p2048_p4)
}
  0x61   : > { %1816 = dma.hbm_to_vmem [thread:$0]  (!%p2336_p7), %s2343_s11, 128, %s395_s13, %s384_s29  }
  0x62   : > { %403 = sbr.rel (%p2271_p8) target bundleno = 1854 (0x73e), region = 60  ;;  %s2362_s6 = sand.u32 (!%p2271_p8), 1, %s2128_s14  }
  0x63   : > { %s2365_s28 = sshll.u32 (!%p2271_p8), %s2362_s6, 3  ;;  %s406_s30 = scalar_lea.sflag (!%p2271_p8), [#allocation6], %s2362_s6 }
  0x64   : > { %s409_s27 = scalar_lea.vmem (!%p2271_p8), [#allocation5], %s2365_s28  ;;  %p2577_p1 = scmp.ne.s32.totalorder (!%p2271_p8), %s2564_s21, 0 }
  0x67   : > { %2103 = dma.done.wait (%p2577_p1), %s406_s30, 128  }
  0x68   : > { %2105 = vsyncadd (%p2577_p1), %s406_s30, 4294967168  ;;  %s414_s8 = sand.u32 1, %s2252_s19   ;;  %s418_s11 = scalar_lea.vmem [#allocation8], %s2365_s28 }
  0x69   : > { %s415_s23 = scalar_lea.sflag [#allocation9], %s414_s8 }
  0x6a   : > { %2107 = dma.done.wait (%p2577_p1), %s415_s23, 128  }
  0x6b   : > { %2109 = vsyncadd (%p2577_p1), %s415_s23, 4294967168  ;;  %p2578_p8 = scmp.eq.s32.totalorder %s2252_s19, 0 }
  0x6d   : > { %2111 = dma.done.wait (%p2578_p8), [#allocation9], 512   ;;  %p2579_p7 = pmov %p2578_p8 }
  0x6f   : > { %2113 = vsyncadd (%p2579_p7), [#allocation9], 4294966784  ;;  %p2580_p6 = pmov %p2579_p7 }
  0x71   : > { %2115 = dma.done.wait (%p2580_p6), [#allocation12], 1024   ;;  %p2581_p12 = pmov %p2580_p6 }
  0x72   : > { %vm479_vm0 = vcmask 261120   ;;  %v478_v0 = vld [vmem:[%s418_s11] sm:$0xff]  ;;  %v2387_v1 = vld [vmem:[%s409_s27] sm:$0xff]  ;;  %v2153_v15 = vmov 0.0   ;;  %vm2154_vm1 = vmmov 0   ;;  %vm599_vm6 = vcmask 523264  }
  0x73   : > { %2117 = vsyncadd (%p2581_p12), [#allocation12], 4294966272  ;;  %v480_v2 = vsel %vm479_vm0, %v478_v0, 0.0  ;;  %v603_v3 = vsel %vm479_vm0, %v2387_v1, 0.0  ;;  %v518_v14 = vld [vmem:[#allocation11 + $0x18] sm:$0xff]  ;;  %1709 = vmatprep.subr.mxu0 %v2153_v15  ;;  %v517_v16 = vld [vmem:[#allocation11 + $0x10] sm:$0xff]  ;;  %1720 = vmatprep.subr.mxu1 %v2153_v15 }
  0x74   : > { %481 = vadd.xlane.f32.xlu0 %v480_v2  ;;  %v641_v17 = vld [vmem:[#allocation10 + $0x18] sm:$0xff]  ;;  %1710 = vmatpush3.msra.mxu0 %v518_v14  ;;  %v640_v18 = vld [vmem:[#allocation10 + $0x10] sm:$0xff]  ;;  %v516_v19 = vld [vmem:[#allocation11 + $0x8] sm:$0xff]  ;;  %vm726_vm7 = vcmask 64512   ;;  %s2155_s4 = smov 112   ;;  %s2156_s24 = smov 120  }
  0x75   : > { %1721 = vmatpush3.msra.mxu1 %v641_v17  ;;  %1711 = vmatprep.subr.mxu0 %v2153_v15  ;;  %v515_v20 = vld [vmem:[#allocation11] sm:$0xff]  ;;  %v639_v21 = vld [vmem:[#allocation10 + $0x8] sm:$0xff]  ;;  %s2157_s0 = smov 104   ;;  %s2158_s30 = smov 88   ;;  %vm1398_vm8 = vcmask 130048   ;;  %vm1400_vm9 = vcmask 195584  }
  0x76   : > { %1722 = vmatprep.subr.mxu1 %v2153_v15  ;;  %1712 = vmatpush3.msra.mxu0 %v517_v16  ;;  %v638_v22 = vld [vmem:[#allocation10] sm:$0xff]  ;;  %v1676_v40 = vld [vmem:[%s2543_s2] ss:$0 sm:$0xff]  ;;  %s2159_s27 = smov 80   ;;  %s2160_s8 = smov 96  }
  0x77   : > { %1717 = vmatprep.mubr.msk.f32.mxu0 %vm2154_vm1, %v2153_v15  ;;  %1713 = vmatprep.subr.mxu0 %v2153_v15  ;;  %v1677_v42 = vld [vmem:[%s2544_s3] ss:$0 sm:$0xff]  ;;  %s2161_s23 = smov 72   ;;  %s2162_s11 = smov 8  }
  0x78   : > { %604 = vadd.xlane.f32.xlu0 %v603_v3  ;;  %1723 = vmatpush3.msra.mxu1 %v640_v18  ;;  %v1654_v49 = vld [vmem:[%s2548_s7] ss:$0 sm:$0xff]  ;;  %s2163_s19 = smov 16   ;;  %s2164_s21 = smov 24  }
  0x79   : > { %1714 = vmatpush3.msra.mxu0 %v516_v19  ;;  %1724 = vmatprep.subr.mxu1 %v2153_v15  ;;  %v1656_v53 = vld [vmem:[%s2546_s5] ss:$0 sm:$0xff]  ;;  %s1673_s10 = sshll.u32 %s2136_s16, 7  ;;  %s471_s13 = scalar_lea.vmem [#allocation14], %s2365_s28 }
  0x7a   : > { %1715 = vmatprep.subr.mxu0 %v2153_v15  ;;  %1728 = vmatprep.mubr.msk.f32.mxu1 %vm2154_vm1, %v2153_v15  ;;  %s1505_s29 = sshll.u32 %s471_s13, 4  ;;  %s2165_s16 = smov [#allocation14]   ;;  %s1506_s29 = int_to_ptr.vmem [resolvable:$true] %s1505_s29 }
  0x7b   : > { %1716 = vmatpush3.msra.mxu0 %v515_v20  ;;  %1725 = vmatpush3.msra.mxu1 %v639_v21  ;;  %s2056_s28 = sshll.u32 %s2165_s16, 4  ;;  %s2057_s28 = int_to_ptr.vmem [resolvable:$false] %s2056_s28 }
  0x7c   : > { %1741 = vmatprep.subr.mxu0 %v2153_v15  ;;  %1726 = vmatprep.subr.mxu1 %v2153_v15  ;;  %p2059_p11 = scmp.lt.s32.totalorder %s1506_s29, %s2057_s28 }
  0x7d   : > { %1727 = vmatpush3.msra.mxu1 %v638_v22 }
  0x7e   : > { %1731 = vmatprep.subr.mxu1 %v2153_v15 }
  0xfd   : > { %v482_v4 = vpop.xlane.xlu0 %481 }
  0xfe   : > { %v484_v5 = vmul.f32 0.03125, %v482_v4 }
 0x100   : > { %v2392_v6 = vsub.f32 %v478_v0, %v484_v5 }
 0x101   : > { %v605_v7 = vpop.xlane.xlu0 %604 }
 0x102   : > { %v607_v8 = vmul.f32 0.03125, %v605_v7  ;;  %v486_v9 = vmul.f32 %v2392_v6, %v2392_v6 }
 0x104   : > { %v2397_v10 = vsub.f32 %v2387_v1, %v607_v8  ;;  %v487_v11 = vsel %vm479_vm0, %v486_v9, 0.0 }
 0x105   : > { %488 = vadd.xlane.f32.xlu1 %v487_v11 }
 0x106   : > { %v609_v12 = vmul.f32 %v2397_v10, %v2397_v10 }
 0x108   : > { %v610_v13 = vsel %vm479_vm0, %v609_v12, 0.0 }
 0x109   : > { %611 = vadd.xlane.f32.xlu1 %v610_v13 }
 0x18e   : > { %v489_v23 = vpop.xlane.xlu1 %488 }
 0x18f   : > { %v490_v24 = vmul.f32 0.03125, %v489_v23 }
 0x191   : > { %v491_v25 = vadd.f32 1e-06, %v490_v24 }
 0x192   : > { %v612_v26 = vpop.xlane.xlu1 %611 }
 0x193   : > { %1894 = vrsqrt.f32 %v491_v25  ;;  %v613_v27 = vmul.f32 0.03125, %v612_v26  ;;  %vm494_vm2 = vcmp.eq.f32.partialorder %v491_v25, inf  ;;  %v497_v31 = vand.u32 2147483648, %v491_v25 }
 0x194   : > { %vm496_vm3 = vcmp.eq.f32.partialorder %v491_v25, 0.0 }
 0x195   : > { %v614_v28 = vadd.f32 1e-06, %v613_v27 }
 0x197   : > { %1896 = vrsqrt.f32 %v614_v28  ;;  %vm617_vm4 = vcmp.eq.f32.partialorder %v614_v28, inf  ;;  %v620_v36 = vand.u32 2147483648, %v614_v28  ;;  %vm619_vm5 = vcmp.eq.f32.partialorder %v614_v28, 0.0 }
 0x1a0   : > { %v1895_v29 = vpop.eup %1894 }
 0x1a1   : > { %v493_v30 = vmul.f32 %v1895_v29, %v491_v25 }
 0x1a3   : > { %v495_v32 = vsel %vm494_vm2, %v491_v25, %v493_v30 }
 0x1a4   : > { %v498_v33 = vsel %vm496_vm3, %v497_v31, %v495_v32  ;;  %v1897_v34 = vpop.eup %1896 }
 0x1a5   : > { %1898 = vrcp.f32 %v498_v33  ;;  %v616_v35 = vmul.f32 %v1897_v34, %v614_v28 }
 0x1a7   : > { %v618_v37 = vsel %vm617_vm4, %v614_v28, %v616_v35 }
 0x1a8   : > { %v621_v38 = vsel %vm619_vm5, %v620_v36, %v618_v37 }
 0x1a9   : > { %1900 = vrcp.f32 %v621_v38 }
 0x1b2   : > { %v1899_v39 = vpop.eup %1898 }
 0x1b3   : > { %v500_v41 = vmul.f32 %v1899_v39, %v2392_v6 }
 0x1b5   : > { %v507_v43 = vmul.f32 %v1676_v40, %v500_v41 }
 0x1b6   : > { %v1901_v44 = vpop.eup %1900 }
 0x1b7   : > { %v514_v45 = vadd.f32 %v1677_v42, %v507_v43  ;;  %v623_v46 = vmul.f32 %v1901_v44, %v2397_v10 }
 0x1b9   : > { %1718 = vmatmul.mubr.msk.f32.vlgmr.msra.gmra.mxu0 %vm479_vm0, %v514_v45  ;;  %v630_v47 = vmul.f32 %v1676_v40, %v623_v46 }
 0x1ba   : > { %1743 = vmatprep.mubr.msk.f32.mxu0 %vm2154_vm1, %v2153_v15 }
 0x1bb   : > { %v637_v48 = vadd.f32 %v1677_v42, %v630_v47 }
 0x1bd   : > { %1729 = vmatmul.mubr.msk.f32.vlgmr.msra.gmra.mxu1 %vm479_vm0, %v637_v48 }
 0x1be   : > { %1733 = vmatprep.mubr.msk.f32.mxu1 %vm2154_vm1, %v2153_v15 }
 0x279   : > { %v595_v50 = vpop.f32.mrf.mxu0 }
 0x27a   : > { %v596_v51 = vadd.f32 %v1654_v49, %v595_v50 }
 0x27b   : > { %v1719_v52 = vpop.f32.mrf.mxu0 }
 0x27c   : > { %600 = vst.msk [vmem:[#allocation2] sm:$0xff] %vm599_vm6, %v596_v51 }
 0x27d   : > { %v718_v54 = vpop.f32.mrf.mxu1 }
 0x27e   : > { %v719_v55 = vadd.f32 %v1656_v53, %v718_v54 }
 0x27f   : > { %v1730_v56 = vpop.f32.mrf.mxu1 }
 0x280   : > { %v722_v57 = vmul.f32 0.35355338, %v719_v55 }
 0x282   : > { %723 = vst.msk [vmem:[#allocation3] sm:$0xff] %vm479_vm0, %v722_v57 }
 0x283   : > { %v2438_v58 = vld [vmem:[#allocation2] sm:$0xff] }
 0x284   : > { %1057 = vrot.lane.b32.xlu1 %v2438_v58, %s2155_s4  ;;  %892 = vrot.lane.b32.xlu0 %v2438_v58, %s2156_s24 }
 0x285   : > { %1732 = vmatpush3.xpose.msk.msra.mxu1 %vm726_vm7, %v2438_v58 }
 0x286   : > { %1736 = vmatprep.subr.mxu1 %v2153_v15 }
 0x288   : > { %1222 = vrot.lane.b32.xlu0 %v2438_v58, %s2157_s0 }
 0x289   : > { %v724_v59 = vld [vmem:[#allocation3] sm:$0xff] }
 0x28a   : > { %890 = vrot.lane.b32.xlu1 %v724_v59, %s2156_s24  ;;  %1734 = vmatmul.mubr.msk.f32.vlgmr.msra.gmra.mxu1 %vm726_vm7, %v724_v59  ;;  %s2582_s24 = sld [smem:[#allocation27_spill]] }
 0x28b   : > { %1738 = vmatprep.mubr.msk.f32.mxu1 %vm2154_vm1, %v2153_v15 }
 0x28e   : > { %1055 = vrot.lane.b32.xlu1 %v724_v59, %s2155_s4 }
 0x292   : > { %1220 = vrot.lane.b32.xlu1 %v724_v59, %s2157_s0  ;;  %v1406_v59 = vld [vmem:[#allocation13 + $0x10] sm:$0xff]  ;;  %s1503_s0 = scalar_lea.hbm %s2582_s24, %s1673_s10 }
 0x2f6   : > { %v893_v60 = vpop.permute.xlu0 %892  ;;  %v1058_v61 = vpop.permute.xlu1 %1057 }
 0x2f7   : > { %1742 = vmatpush3.xpose.msk.msra.mxu0 %vm726_vm7, %v893_v60  ;;  %v1405_v60 = vld [vmem:[#allocation13 + $0x8] sm:$0xff] }
 0x2f8   : > { %1751 = vmatprep.subr.mxu0 %v2153_v15 }
 0x2fa   : > { %v1223_v0 = vpop.permute.xlu0 %1222 }
 0x2fc   : > { %v891_v62 = vpop.permute.xlu1 %890 }
 0x2fd   : > { %1744 = vmatmul.mubr.msk.f32.vlgmr.msra.gmra.mxu0 %vm726_vm7, %v891_v62 }
 0x2fe   : > { %1752 = vmatpush3.xpose.msk.msra.mxu0 %vm726_vm7, %v1058_v61  ;;  %1753 = vmatprep.mubr.msk.f32.mxu0 %vm2154_vm1, %v2153_v15  ;;  %v1404_v61 = vld [vmem:[#allocation13] sm:$0xff] }
 0x2ff   : > { %1761 = vmatprep.subr.mxu0 %v2153_v15 }
 0x300   : > { %v1056_v63 = vpop.permute.xlu1 %1055 }
 0x301   : > { %1754 = vmatmul.mubr.msk.f32.vlgmr.msra.gmra.mxu0 %vm726_vm7, %v1056_v63 }
 0x302   : > { %1762 = vmatpush3.xpose.msk.msra.mxu0 %vm726_vm7, %v1223_v0  ;;  %1763 = vmatprep.mubr.msk.f32.mxu0 %vm2154_vm1, %v2153_v15 }
 0x303   : > { %1771 = vmatprep.subr.mxu0 %v2153_v15 }
 0x304   : > { %v1221_v2 = vpop.permute.xlu1 %1220 }
 0x305   : > { %1764 = vmatmul.mubr.msk.f32.vlgmr.msra.gmra.mxu0 %vm726_vm7, %v1221_v2 }
 0x306   : > { %1779 = vmatprep.mubr.msk.f32.mxu0 %vm2154_vm1, %v2153_v15 }
 0x34a   : > { %v799_v3 = vpop.f32.mrf.mxu1 }
 0x34b   : > { %v803_v4 = vsel %vm726_vm7, %v799_v3, -inf }
 0x34c   : > { %804 = vmax.xlane.f32.xlu0 %v803_v4  ;;  %v1735_v5 = vpop.f32.mrf.mxu1 }
 0x3bd   : > { %v964_v6 = vpop.f32.mrf.mxu0 }
 0x3be   : > { %v968_v7 = vsel %vm726_vm7, %v964_v6, -inf }
 0x3bf   : > { %969 = vmax.xlane.f32.xlu1 %v968_v7  ;;  %v1745_v8 = vpop.f32.mrf.mxu0  ;;  %v1670_v7 = vld [vmem:[%s2550_s9] ss:$0 sm:$0xff] }
 0x3c1   : > { %v1129_v9 = vpop.f32.mrf.mxu0 }
 0x3c2   : > { %v1133_v10 = vsel %vm726_vm7, %v1129_v9, -inf }
 0x3c3   : > { %1134 = vmax.xlane.f32.xlu0 %v1133_v10  ;;  %v1755_v11 = vpop.f32.mrf.mxu0 }
 0x3c5   : > { %v1294_v12 = vpop.f32.mrf.mxu0 }
 0x3c6   : > { %v1298_v13 = vsel %vm726_vm7, %v1294_v12, -inf }
 0x3c7   : > { %1299 = vmax.xlane.f32.xlu0 %v1298_v13  ;;  %v1765_v14 = vpop.f32.mrf.mxu0 }
 0x3d5   : > { %v805_v16 = vpop.xlane.xlu0 %804 }
 0x3d6   : > { %v806_v17 = vsub.f32 %v799_v3, %v805_v16 }
 0x3d8   : > { %v807_v18 = vmul.f32 1.442695, %v806_v17 }
 0x3da   : > { %1902 = vpow2.f32 %v807_v18 }
 0x3e7   : > { %v1903_v19 = vpop.eup %1902 }
 0x3e8   : > { %v809_v20 = vsel %vm726_vm7, %v1903_v19, 0.0 }
 0x3e9   : > { %810 = vadd.xlane.f32.xlu0 %v809_v20 }
 0x448   : > { %v970_v21 = vpop.xlane.xlu1 %969 }
 0x449   : > { %v971_v22 = vsub.f32 %v964_v6, %v970_v21 }
 0x44b   : > { %v972_v23 = vmul.f32 1.442695, %v971_v22 }
 0x44c   : > { %v1135_v24 = vpop.xlane.xlu0 %1134 }
 0x44d   : > { %1904 = vpow2.f32 %v972_v23  ;;  %v1136_v25 = vsub.f32 %v1129_v9, %v1135_v24 }
 0x44f   : > { %v1137_v26 = vmul.f32 1.442695, %v1136_v25 }
 0x450   : > { %v1300_v31 = vpop.xlane.xlu0 %1299 }
 0x451   : > { %1906 = vpow2.f32 %v1137_v26  ;;  %v1301_v32 = vsub.f32 %v1294_v12, %v1300_v31 }
 0x453   : > { %v1302_v33 = vmul.f32 1.442695, %v1301_v32 }
 0x455   : > { %1908 = vpow2.f32 %v1302_v33 }
 0x45a   : > { %v1905_v27 = vpop.eup %1904 }
 0x45b   : > { %v974_v28 = vsel %vm726_vm7, %v1905_v27, 0.0 }
 0x45c   : > { %975 = vadd.xlane.f32.xlu1 %v974_v28 }
 0x45e   : > { %v1907_v29 = vpop.eup %1906 }
 0x45f   : > { %v1139_v30 = vsel %vm726_vm7, %v1907_v29, 0.0 }
 0x460   : > { %1140 = vadd.xlane.f32.xlu0 %v1139_v30 }
 0x462   : > { %v1909_v34 = vpop.eup %1908 }
 0x463   : > { %v1304_v35 = vsel %vm726_vm7, %v1909_v34, 0.0 }
 0x46d   : > { %979 = vrot.lane.b32.xlu1 %v2438_v58, %s2158_s30  ;;  %s1491_s30 = scalar_lea.sflag [#allocation7], %s2362_s6 }
 0x471   : > { %1144 = vrot.lane.b32.xlu1 %v2438_v58, %s2159_s27  ;;  %s2052_s27 = scalar_lea.vmem %s1506_s29, 128 }
 0x472   : > { %v811_v36 = vpop.xlane.xlu0 %810  ;;  %p2053_p0 = scmp.ne.s32.totalorder %s1506_s29, %s2052_s27 }
 0x473   : > { %1910 = vrcp.f32 %v811_v36 }
 0x474   : > { %p2054_p3 = pnand %p2053_p0, %p2317_p5 }
 0x476   : > { %814 = vrot.lane.b32.xlu0 %v2438_v58, %s2160_s8  ;;  %p2055_p10 = pneg %p2054_p3  ;;  %s2058_s8 = scalar_lea.vmem %s2057_s28, 256 }
 0x477   : > { %p2060_p9 = scmp.lt.s32.totalorder %s2058_s8, %s2052_s27 }
 0x479   : > { %p2061_p13 = por %p2060_p9, %p2059_p11 }
 0x47b   : > { %p2062_p2 = pnand %p2061_p13, %p2055_p10 }
 0x480   : > { %v1911_v39 = vpop.eup %1910 }
 0x481   : > { %v813_v41 = vmul.f32 %v1911_v39, %v1903_v19 }
 0x495   : > { %1305 = vadd.xlane.f32.xlu1 %v1304_v35 }
 0x4a6   : > { %1309 = vrot.lane.b32.xlu1 %v2438_v58, %s2161_s23  ;;  %v1407_v58 = vld [vmem:[#allocation13 + $0x18] sm:$0xff] }
 0x4a7   : > { %1772 = vmatpush3.msra.mxu0 %v1407_v58 }
 0x4a8   : > { %1773 = vmatprep.subr.mxu0 %v2153_v15 }
 0x4a9   : > { %1774 = vmatpush3.msra.mxu0 %v1406_v59 }
 0x4aa   : > { %1775 = vmatprep.subr.mxu0 %v2153_v15 }
 0x4ab   : > { %1776 = vmatpush3.msra.mxu0 %v1405_v60 }
 0x4ac   : > { %1777 = vmatprep.subr.mxu0 %v2153_v15 }
 0x4ad   : > { %1778 = vmatpush3.msra.mxu0 %v1404_v61 }
 0x4e5   : > { %v976_v37 = vpop.xlane.xlu1 %975 }
 0x4e6   : > { %1912 = vrcp.f32 %v976_v37 }
 0x4e9   : > { %v1141_v38 = vpop.xlane.xlu0 %1140  ;;  %v980_v42 = vpop.permute.xlu1 %979 }
 0x4ea   : > { %1914 = vrcp.f32 %v1141_v38 }
 0x4ed   : > { %v815_v40 = vpop.permute.xlu0 %814  ;;  %v1145_v45 = vpop.permute.xlu1 %1144 }
 0x4ee   : > { %1737 = vmatpush3.msra.mxu1 %v815_v40 }
 0x4ef   : > { %1739 = vmatmul.mubr.msk.f32.vlgmr.msra.gmra.mxu1 %vm726_vm7, %v813_v41  ;;  %1746 = vmatprep.subr.mxu1 %v2153_v15 }
 0x4f0   : > { %1747 = vmatpush3.msra.mxu1 %v980_v42  ;;  %1748 = vmatprep.mubr.msk.f32.mxu1 %vm2154_vm1, %v2153_v15 }
 0x4f1   : > { %1756 = vmatprep.subr.mxu1 %v2153_v15 }
 0x4f3   : > { %v1913_v43 = vpop.eup %1912 }
 0x4f4   : > { %v978_v44 = vmul.f32 %v1913_v43, %v1905_v27 }
 0x4f6   : > { %1749 = vmatmul.mubr.msk.f32.vlgmr.msra.gmra.mxu1 %vm726_vm7, %v978_v44 }
 0x4f7   : > { %v1915_v46 = vpop.eup %1914  ;;  %1757 = vmatpush3.msra.mxu1 %v1145_v45  ;;  %1758 = vmatprep.mubr.msk.f32.mxu1 %vm2154_vm1, %v2153_v15 }
 0x4f8   : > { %v1143_v47 = vmul.f32 %v1915_v46, %v1907_v29  ;;  %1766 = vmatprep.subr.mxu1 %v2153_v15 }
 0x4fa   : > { %1759 = vmatmul.mubr.msk.f32.vlgmr.msra.gmra.mxu1 %vm726_vm7, %v1143_v47 }
 0x4fb   : > { %1768 = vmatprep.mubr.msk.f32.mxu1 %vm2154_vm1, %v2153_v15 }
 0x51e   : > { %v1306_v48 = vpop.xlane.xlu1 %1305 }
 0x51f   : > { %1916 = vrcp.f32 %v1306_v48 }
 0x522   : > { %v1310_v49 = vpop.permute.xlu1 %1309 }
 0x523   : > { %1767 = vmatpush3.msra.mxu1 %v1310_v49 }
 0x52c   : > { %v1917_v50 = vpop.eup %1916 }
 0x52d   : > { %v1308_v51 = vmul.f32 %v1917_v50, %v1909_v34 }
 0x52f   : > { %1769 = vmatmul.mubr.msk.f32.vlgmr.msra.gmra.mxu1 %vm726_vm7, %v1308_v51 }
 0x5af   : > { %v886_v52 = vpop.f32.mrf.mxu1 }
 0x5b1   : > { %v1740_v53 = vpop.f32.mrf.mxu1 }
 0x5b6   : > { %v1051_v54 = vpop.f32.mrf.mxu1 }
 0x5b7   : > { %1386 = vrot.lane.b32.xlu0 %v1051_v54, %s2162_s11 }
 0x5b8   : > { %v1750_v55 = vpop.f32.mrf.mxu1 }
 0x5ba   : > { %v1216_v56 = vpop.f32.mrf.mxu1 }
 0x5bb   : > { %1390 = vrot.lane.b32.xlu1 %v1216_v56, %s2163_s19 }
 0x5bc   : > { %v1760_v57 = vpop.f32.mrf.mxu1 }
 0x5ef   : > { %v1381_v62 = vpop.f32.mrf.mxu1 }
 0x5f0   : > { %1394 = vrot.lane.b32.xlu0 %v1381_v62, %s2164_s21 }
 0x5f1   : > { %v1770_v63 = vpop.f32.mrf.mxu1 }
 0x629   : > { %v1387_v0 = vpop.permute.xlu0 %1386 }
 0x62a   : > { %v1397_v3 = vsel %vm726_vm7, %v886_v52, %v1387_v0 }
 0x62d   : > { %v1391_v2 = vpop.permute.xlu1 %1390 }
 0x62e   : > { %v1399_v4 = vsel %vm1398_vm8, %v1397_v3, %v1391_v2 }
 0x662   : > { %v1395_v5 = vpop.permute.xlu0 %1394 }
 0x663   : > { %v1401_v6 = vsel %vm1400_vm9, %v1399_v4, %v1395_v5 }
 0x664   : > { %1402 = vst.msk [vmem:[#allocation4] sm:$0xff] %vm479_vm0, %v1401_v6 }
 0x66b   : > { %v1403_v15 = vld [vmem:[#allocation4] sm:$0xff] }
 0x66c   : > { %1780 = vmatmul.mubr.msk.f32.vlgmr.msra.gmra.mxu0 %vm479_vm0, %v1403_v15 }
 0x72c   : > { %v1484_v8 = vpop.f32.mrf.mxu0 }
 0x72d   : > { %v1485_v9 = vadd.f32 %v1670_v7, %v1484_v8 }
 0x72e   : > { %v1781_v10 = vpop.f32.mrf.mxu0 }
 0x72f   : > { %v1488_v11 = vadd.f32 %v1485_v9, %v2387_v1 }
 0x731   : > { %1489 = vst.msk [vmem:[%s471_s13] sm:$0xff] %vm479_vm0, %v1488_v11 }
 0x732   : > { %2065 = shalt.err (!%p2062_p2)
}
 0x733   : > { %s2066_s23 = scalar_lea.hbm %s1503_s0, 128  ;;  %s2070_s19 = scalar_lea.hbm %s2582_s24, 256 }
 0x734   : > { %p2067_p4 = scmp.ne.s32.totalorder %s1503_s0, %s2066_s23  ;;  %p2071_p7 = scmp.lt.s32.totalorder %s1503_s0, %s2582_s24 }
 0x735   : > { %p2072_p6 = scmp.lt.s32.totalorder %s2070_s19, %s2066_s23 }
 0x736   : > { %p2068_p1 = pnand %p2067_p4, %p2317_p5 }
 0x737   : > { %p2073_p12 = por %p2072_p6, %p2071_p7 }
 0x738   : > { %p2069_p8 = pneg %p2068_p1 }
 0x73a   : > { %p2074_p0 = pnand %p2073_p12, %p2069_p8 }
 0x73c   : > { %2077 = shalt.err (!%p2074_p0)
}
 0x73d   : > { %1798 = dma.vmem_to_hbm [thread:$0]  (%p2317_p5), %s1506_s29, 128, %s1503_s0, %s1491_s30  }
 0x73e PF: > { %s2583_s25 = sld [smem:[#allocation20_spill]]  ;;  %p2586_p10 = scmp.ge.s32.totalorder %s2144_s18, 2 }
 0x73f   : > { %s2584_s10 = sld [smem:[#allocation21_spill]] }
 0x744   : > { %s1517_s13 = sand.u32 1, %s2583_s25  }
 0x745   : > { %p2585_p3 = scmp.ne.s32.totalorder %s2584_s10, 0  ;;  %s1518_s12 = scalar_lea.sflag [#allocation7], %s1517_s13 }
 0x747   : > { %p1818_p11 = pnand %p2586_p10, %p2585_p3 }
 0x749   : > { %p1819_p9 = pneg %p1818_p11 }
 0x74b   : > { %2119 = dma.done.wait (%p1819_p9), %s1518_s12, 128  }
 0x74c   : > { %2121 = vsyncadd (%p1819_p9), %s1518_s12, 4294967168  ;;  %s30_s18 = sadd.s32 1, %s2144_s18   ;;  %s2587_s26 = sld [smem:[#allocation22_spill]] }
 0x74d   : > { %p27_p13 = scmp.ge.s32.totalorder %s30_s18, 4   ;;  %s2588_s13 = smov %s2128_s14 }
 0x74e   : > { %s2589_s14 = smov %s2132_s15  ;;  %s2590_s15 = smov %s2329_s20 }
 0x74f   : > { %s2591_s16 = smov %s2140_s17  ;;  %29 = sbr.rel (!%p27_p13) target bundleno = 15 (0xf), region = 134 }
 0x752   : > { %s2592_s17 = smov %s2587_s26 }
 0x754   :  { %1523 = vsyncpa [#allocation6], 1 }
 0x755   :  { %1525 = vsyncpa [#allocation6 + $0x1], 1 }
 0x756   :  { %1526 = vsyncpa [#allocation9], 1 }
 0x757   :  { %1528 = vsyncpa [#allocation9 + $0x1], 1 }
 0x758   :  { %1529 = vsyncpa [#allocation12], 1 }
 0x759   :  { %1530 = vsyncpa [#allocation7], 1 }
 0x75a   :  { %1532 = vsyncpa [#allocation7 + $0x1], 1 }

</bundles_post_ra>
